<compile_context>
chip_gen: v7x
topology: tpu7x:2x2x1
jax: 0.10.0
libtpu: 0.0.40
codegen_flags: <defaults>
</compile_context>

<pallas_src>
import jax
import jax.numpy as jnp
from jax.experimental import pallas as pl
from jax.experimental.pallas import tpu as pltpu

INPUT_DIM = 128
HIDDEN_DIM = 128
OUTPUT_DIM = 64
NUM_HEADS = 4   # numerically irrelevant here (sequence length == 1)
PAD_DIM = 128   # lane-dense padded width for the 64-wide tail of the network


def hybrid_kernel(x_ref, w_ref, b_ref, o_ref):
    # x_ref: (TM, 128) native dtype   w_ref: (3, 128, 128) matmul dtype
    # b_ref: (3, 128) f32             o_ref: (TM, 64) output dtype
    mm_dtype = w_ref.dtype
    x = x_ref[...].astype(mm_dtype)   # in-kernel cast: free VPU work under DMA

    w_fs = w_ref[0]    # feature_selection
    w_mid = w_ref[1]   # folded v_proj @ out_proj @ feature_fusion (zero-padded cols)
    w_out = w_ref[2]   # output_layer (zero-padded rows/cols)

    b_fs = b_ref[0:1, :]
    b_mid = b_ref[1:2, :]
    b_out = b_ref[2:3, :]

    # feature_selection + ReLU (f32 accumulate / f32 elementwise)
    h = jnp.dot(x, w_fs, preferred_element_type=jnp.float32) + b_fs
    h = jnp.maximum(h, 0.0)

    # size-1 softmax gate and seq-len-1 MHA are exact identities / folded;
    # folded chain (v_proj -> out_proj -> feature_fusion) + ReLU:
    f = jnp.dot(h.astype(mm_dtype), w_mid,
                preferred_element_type=jnp.float32) + b_mid
    f = jnp.maximum(f, 0.0)

    # output_layer (padded to 128 lanes internally; padded cols are exactly 0)
    out = jnp.dot(f.astype(mm_dtype), w_out,
                  preferred_element_type=jnp.float32) + b_out

    # Store only the real 64 output lanes directly into the (TM, 64) block.
    o_ref[...] = out[:, :OUTPUT_DIM].astype(o_ref.dtype)


def _pick_tile_m(n, cap=4096):
    """Row-tile heuristic.

    Pick the largest tile that divides n, is a multiple of 8, and <= cap
    (~10-12 MiB VMEM footprint at 4096 rows).  For large batches prefer an
    even grid with >= 4 steps (>= 2 per TensorCore on v7x) so each core keeps
    prefetch/writeback overlap - but never shrink below 512 rows just to get
    there, since ~0.35 us per-step overhead then starts to dominate.
    """
    cands = [t for t in range(8, min(n, cap) + 1, 8) if n % t == 0]
    if not cands:
        return n
    good = [t for t in cands if n // t >= 4 and (n // t) % 2 == 0]
    if good and max(good) >= min(512, max(cands)):
        return max(good)
    return max(cands)


def prepare_packed_params(params, *, use_bf16=True):
    (w_fs, b_fs, w_attn, w_v, b_v, w_ao, b_ao, w_fus, b_fus, w_out, b_out) = params
    del w_attn  # size-1 softmax gate is an exact identity

    # Fold v_proj -> out_proj -> feature_fusion (no nonlinearity in between).
    w_mid = w_v @ w_ao @ w_fus                    # (128, 64)
    b_mid = (b_v @ w_ao + b_ao) @ w_fus + b_fus   # (1, 64)

    def pad_cols(a):
        return jnp.pad(a, ((0, 0), (0, PAD_DIM - a.shape[1])))

    w_mid_p = pad_cols(w_mid)                                      # (128, 128)
    b_mid_p = pad_cols(b_mid)                                      # (1, 128)
    w_out_p = jnp.pad(w_out, ((0, PAD_DIM - w_out.shape[0]),
                              (0, PAD_DIM - w_out.shape[1])))      # (128, 128)
    b_out_p = pad_cols(b_out)                                      # (1, 128)

    w_packed = jnp.stack([w_fs, w_mid_p, w_out_p], axis=0)         # (3, 128, 128)
    b_packed = jnp.concatenate([b_fs, b_mid_p, b_out_p], axis=0)   # (3, 128)

    mm_dtype = jnp.bfloat16 if use_bf16 else jnp.float32
    return w_packed.astype(mm_dtype), b_packed.astype(jnp.float32)


def hybrid_forward(x, params, *, tile_m=None, use_bf16=True,
                   out_dtype=jnp.float32):
    n, d = x.shape
    assert d == INPUT_DIM
    assert n % 8 == 0, "batch must be a multiple of 8 (sublane tiling)"

    if tile_m is None:
        tile_m = _pick_tile_m(n)
    assert n % tile_m == 0 and tile_m % 8 == 0

    w_packed, b_packed = prepare_packed_params(params, use_bf16=use_bf16)

    x_item = jnp.dtype(x.dtype).itemsize
    w_item = jnp.dtype(w_packed.dtype).itemsize
    o_item = jnp.dtype(out_dtype).itemsize
    cost = pl.CostEstimate(
        flops=2 * n * 3 * HIDDEN_DIM * PAD_DIM,
        transcendentals=0,
        bytes_accessed=(n * INPUT_DIM * x_item          # x (native dtype)
                        + n * OUTPUT_DIM * o_item       # 64-wide output
                        + 3 * HIDDEN_DIM * PAD_DIM * w_item
                        + 3 * PAD_DIM * 4),
    )

    out = pl.pallas_call(
        hybrid_kernel,
        out_shape=jax.ShapeDtypeStruct((n, OUTPUT_DIM), out_dtype),
        grid_spec=pltpu.PrefetchScalarGridSpec(
            num_scalar_prefetch=0,
            grid=(n // tile_m,),
            in_specs=[
                pl.BlockSpec((tile_m, INPUT_DIM), lambda i: (i, 0)),
                pl.BlockSpec((3, HIDDEN_DIM, PAD_DIM), lambda i: (0, 0, 0)),
                pl.BlockSpec((3, PAD_DIM), lambda i: (0, 0)),
            ],
            out_specs=pl.BlockSpec((tile_m, OUTPUT_DIM), lambda i: (i, 0)),
        ),
        compiler_params=pltpu.CompilerParams(
            dimension_semantics=("parallel",),
            vmem_limit_bytes=32 * 1024 * 1024),
        cost_estimate=cost,
    )(x, w_packed, b_packed)

    return out


def init_params(key):
    """Deterministic parameter init (shapes match the PyTorch module)."""
    ks = jax.random.split(key, 11)

    def unif(k, shape, fan_in):
        bound = 1.0 / jnp.sqrt(jnp.float32(fan_in))
        return jax.random.uniform(k, shape, jnp.float32, -bound, bound)

    # stored as (in, out); biases as (1, out)
    w_fs = unif(ks[0], (INPUT_DIM, HIDDEN_DIM), INPUT_DIM)
    b_fs = unif(ks[1], (1, HIDDEN_DIM), INPUT_DIM)
    w_attn = unif(ks[2], (HIDDEN_DIM, 1), HIDDEN_DIM)          # Linear(hidden, 1, bias=False)
    w_v = unif(ks[3], (HIDDEN_DIM, HIDDEN_DIM), HIDDEN_DIM)    # MHA in_proj (V slice)
    b_v = unif(ks[4], (1, HIDDEN_DIM), HIDDEN_DIM)
    w_ao = unif(ks[5], (HIDDEN_DIM, HIDDEN_DIM), HIDDEN_DIM)   # MHA out_proj
    b_ao = unif(ks[6], (1, HIDDEN_DIM), HIDDEN_DIM)
    w_fus = unif(ks[7], (HIDDEN_DIM, OUTPUT_DIM), HIDDEN_DIM)
    b_fus = unif(ks[8], (1, OUTPUT_DIM), HIDDEN_DIM)
    w_out = unif(ks[9], (OUTPUT_DIM, OUTPUT_DIM), OUTPUT_DIM)
    b_out = unif(ks[10], (1, OUTPUT_DIM), OUTPUT_DIM)
    return (w_fs, b_fs, w_attn, w_v, b_v, w_ao, b_ao, w_fus, b_fus, w_out, b_out)


def reference_forward(x, params):
    """Plain-JAX reference mirroring the PyTorch forward (unfolded, f32)."""
    (w_fs, b_fs, w_attn, w_v, b_v, w_ao, b_ao, w_fus, b_fus, w_out, b_out) = params
    h = jnp.maximum(x @ w_fs + b_fs, 0.0)
    s = h @ w_attn                                    # (N, 1)
    p = jax.nn.softmax(s, axis=1)                     # size-1 axis -> ones
    h = h * p
    v = h @ w_v + b_v                                 # MHA value proj
    a = v @ w_ao + b_ao                               # MHA out proj (softmax over 1 key == 1)
    f = jnp.maximum(a @ w_fus + b_fus, 0.0)
    return f @ w_out + b_out


if __name__ == "__main__":
    key = jax.random.PRNGKey(0)
    k_x, k_p = jax.random.split(key)

    N = 256  # small feature-row batch for the self-test
    x = jax.random.normal(k_x, (N, INPUT_DIM), jnp.float32)
    params = init_params(k_p)

    ref = reference_forward(x, params)

    # f32-matmul path: weight folding only -> matches reference tightly.
    out_f32 = jax.block_until_ready(hybrid_forward(x, params, use_bf16=False))
    assert out_f32.shape == (N, OUTPUT_DIM)
    assert out_f32.dtype == jnp.float32
    assert jnp.allclose(out_f32, ref, atol=1e-4, rtol=1e-4), "f32 path mismatch"

    # bf16-MXU fast path (f32 output): looser tolerance for bf16 rounding.
    out_bf16 = jax.block_until_ready(hybrid_forward(x, params, use_bf16=True))
    assert out_bf16.shape == (N, OUTPUT_DIM)
    assert jnp.allclose(out_bf16, ref, atol=5e-2, rtol=5e-2), "bf16 path mismatch"

    # bf16 matmuls + bf16 output writeback (smallest HBM traffic variant).
    out_bf16_o = jax.block_until_ready(
        hybrid_forward(x, params, use_bf16=True, out_dtype=jnp.bfloat16))
    assert out_bf16_o.shape == (N, OUTPUT_DIM)
    assert out_bf16_o.dtype == jnp.bfloat16
    assert jnp.allclose(out_bf16_o.astype(jnp.float32), ref,
                        atol=1e-1, rtol=1e-1), "bf16-out path mismatch"

    print("KERNEL_OK")
</pallas_src>

<mosaic_0001>
module attributes {stable_mosaic.version = 11 : i64} {
  func.func @hybrid_kernel(%arg0: i32, %arg1: memref<256x128xf32, #tpu.memory_space<vmem>>, %arg2: memref<3x128x128xf32, #tpu.memory_space<vmem>>, %arg3: memref<3x128xf32, #tpu.memory_space<vmem>>, %arg4: memref<256x64xf32, #tpu.memory_space<vmem>>) attributes {dimension_semantics = [#tpu.dimension_semantics<parallel>], iteration_bounds = array<i64: 1>, scalar_prefetch = 0 : i64, scratch_operands = 0 : i64, tpu.core_type = #tpu.core_type<tc>, window_params = [{transform_indices = @transform_0, window_bounds = array<i64: 256, 128>}, {pipeline_mode = #tpu.pipeline_mode<synchronous>, transform_indices = @transform_1, window_bounds = array<i64: 3, 128, 128>}, {pipeline_mode = #tpu.pipeline_mode<synchronous>, transform_indices = @transform_2, window_bounds = array<i64: 3, 128>}, {transform_indices = @transform_3, window_bounds = array<i64: 256, 64>}]} {
    %c0 = arith.constant 0 : index
    %c0_0 = arith.constant 0 : index
    %0 = vector.load %arg1[%c0, %c0_0] : memref<256x128xf32, #tpu.memory_space<vmem>>, vector<256x128xf32>
    %c0_1 = arith.constant 0 : index
    %c0_2 = arith.constant 0 : index
    %c0_3 = arith.constant 0 : index
    %1 = vector.load %arg2[%c0_1, %c0_2, %c0_3] : memref<3x128x128xf32, #tpu.memory_space<vmem>>, vector<1x128x128xf32>
    %2 = vector.shape_cast %1 : vector<1x128x128xf32> to vector<128x128xf32>
    %c1 = arith.constant 1 : index
    %c0_4 = arith.constant 0 : index
    %c0_5 = arith.constant 0 : index
    %3 = vector.load %arg2[%c1, %c0_4, %c0_5] : memref<3x128x128xf32, #tpu.memory_space<vmem>>, vector<1x128x128xf32>
    %4 = vector.shape_cast %3 : vector<1x128x128xf32> to vector<128x128xf32>
    %c2 = arith.constant 2 : index
    %c0_6 = arith.constant 0 : index
    %c0_7 = arith.constant 0 : index
    %5 = vector.load %arg2[%c2, %c0_6, %c0_7] : memref<3x128x128xf32, #tpu.memory_space<vmem>>, vector<1x128x128xf32>
    %6 = vector.shape_cast %5 : vector<1x128x128xf32> to vector<128x128xf32>
    %c0_8 = arith.constant 0 : index
    %c0_9 = arith.constant 0 : index
    %7 = vector.load %arg3[%c0_8, %c0_9] : memref<3x128xf32, #tpu.memory_space<vmem>>, vector<1x128xf32>
    %c1_10 = arith.constant 1 : index
    %c0_11 = arith.constant 0 : index
    %8 = vector.load %arg3[%c1_10, %c0_11] : memref<3x128xf32, #tpu.memory_space<vmem>>, vector<1x128xf32>
    %c2_12 = arith.constant 2 : index
    %c0_13 = arith.constant 0 : index
    %9 = vector.load %arg3[%c2_12, %c0_13] : memref<3x128xf32, #tpu.memory_space<vmem>>, vector<1x128xf32>
    %cst = arith.constant dense<0.000000e+00> : vector<256x128xf32>
    %10 = tpu.matmul %0, %2, %cst {dimension_numbers = #tpu.dot_dimension_numbers<[1], [0], [0], [1], [0, 0, 1, 1], [], []>} : vector<256x128xf32>, vector<128x128xf32>, vector<256x128xf32> -> vector<256x128xf32>
    %11 = vector.broadcast %7 : vector<1x128xf32> to vector<256x128xf32>
    %12 = arith.addf %10, %11 : vector<256x128xf32>
    %cst_14 = arith.constant 0.000000e+00 : f32
    %13 = vector.broadcast %cst_14 : f32 to vector<256x128xf32>
    %14 = arith.maximumf %12, %13 : vector<256x128xf32>
    %cst_15 = arith.constant dense<0.000000e+00> : vector<256x128xf32>
    %15 = tpu.matmul %14, %4, %cst_15 {dimension_numbers = #tpu.dot_dimension_numbers<[1], [0], [0], [1], [0, 0, 1, 1], [], []>} : vector<256x128xf32>, vector<128x128xf32>, vector<256x128xf32> -> vector<256x128xf32>
    %16 = vector.broadcast %8 : vector<1x128xf32> to vector<256x128xf32>
    %17 = arith.addf %15, %16 : vector<256x128xf32>
    %cst_16 = arith.constant 0.000000e+00 : f32
    %18 = vector.broadcast %cst_16 : f32 to vector<256x128xf32>
    %19 = arith.maximumf %17, %18 : vector<256x128xf32>
    %cst_17 = arith.constant dense<0.000000e+00> : vector<256x128xf32>
    %20 = tpu.matmul %19, %6, %cst_17 {dimension_numbers = #tpu.dot_dimension_numbers<[1], [0], [0], [1], [0, 0, 1, 1], [], []>} : vector<256x128xf32>, vector<128x128xf32>, vector<256x128xf32> -> vector<256x128xf32>
    %21 = vector.broadcast %9 : vector<1x128xf32> to vector<256x128xf32>
    %22 = arith.addf %20, %21 : vector<256x128xf32>
    %23 = vector.extract_strided_slice %22 {offsets = [0, 0], sizes = [256, 64], strides = [1, 1]} : vector<256x128xf32> to vector<256x64xf32>
    %c0_18 = arith.constant 0 : index
    %c0_19 = arith.constant 0 : index
    %24 = vector.load %arg4[%c0_18, %c0_19] : memref<256x64xf32, #tpu.memory_space<vmem>>, vector<256x64xf32>
    tpu.vector_store %arg4[%c0_18, %c0_19], %23 {strides = array<i32>} : memref<256x64xf32, #tpu.memory_space<vmem>>, vector<256x64xf32>,
    return
  }
  func.func @transform_0(%arg0: i32) -> (i32, i32) {
    %c0_i32 = arith.constant 0 : i32
    %c0_i32_0 = arith.constant 0 : i32
    return %arg0, %c0_i32 : i32, i32
  }
  func.func @transform_1(%arg0: i32) -> (i32, i32, i32) {
    %c0_i32 = arith.constant 0 : i32
    %c0_i32_0 = arith.constant 0 : i32
    %c0_i32_1 = arith.constant 0 : i32
    %c0_i32_2 = arith.constant 0 : i32
    return %c0_i32, %c0_i32_0, %c0_i32_1 : i32, i32, i32
  }
  func.func @transform_2(%arg0: i32) -> (i32, i32) {
    %c0_i32 = arith.constant 0 : i32
    %c0_i32_0 = arith.constant 0 : i32
    %c0_i32_1 = arith.constant 0 : i32
    return %c0_i32, %c0_i32_0 : i32, i32
  }
  func.func @transform_3(%arg0: i32) -> (i32, i32) {
    %c0_i32 = arith.constant 0 : i32
    %c0_i32_0 = arith.constant 0 : i32
    return %arg0, %c0_i32 : i32, i32
  }
}

</mosaic_0001>

<bundles_post_ra>
// kernel: tpu_custom_call.1
= control target key start
LH: loop header
LB: loop body
LE: loop exit
PB: predicated region body
PF: predicated region fallthrough
CT: control target
= control target key end

     0   :  { %8 = vsyncpa [#allocation3], 0  ;;  %s1782_s0 = inlined_call_operand.hbm [shape: f32[256,128], index: 0, kind: input, shape index: {}]   ;;  %s1783_s1 = inlined_call_operand.hbm [shape: f32[3,128,128], index: 1, kind: input, shape index: {}]   ;;  %s1784_s2 = inlined_call_operand.vmem [shape: f32[3,128], index: 2, kind: input, shape index: {}]   ;;  %s1785_s3 = inlined_call_operand.vmem [shape: f32[256,64], index: 3, kind: output, shape index: {}]  }
   0x1   :  { %9 = vsyncpa [#allocation5], 0  ;;  %s1468_s12 = smov [#allocation2]   ;;  %s1420_s16 = scalar_lea.hbm %s1782_s0, 4096 }
   0x2   :  { %s15_s13 = sshll.u32 %s1468_s12, 4  ;;  %p1421_p0 = scmp.ne.s32.totalorder %s1782_s0, %s1420_s16  ;;  %s16_s13 = int_to_ptr.vmem [resolvable:$true] %s15_s13 }
   0x3   :  { %p1424_p1 = scmp.lt.u32.totalorder %s1420_s16, %s1782_s0 }
   0x5   :  { %p1426_p2 = pnand %p1424_p1, %p1421_p0 }
   0x7   :  { %1429 = shalt.err (!%p1426_p2)
}
   0x8   :  { %s1430_s21 = scalar_lea.vmem %s16_s13, 4096  ;;  %p1435_p4 = scmp.lt.s32.totalorder %s16_s13, %s16_s13 }
   0x9   :  { %p1431_p3 = scmp.ne.s32.totalorder %s16_s13, %s1430_s21  ;;  %p1436_p5 = scmp.lt.s32.totalorder %s1430_s21, %s1430_s21 }
   0xb   :  { %p1437_p6 = por %p1436_p5, %p1435_p4 }
   0xd   :  { %p1438_p7 = pnand %p1437_p6, %p1431_p3 }
   0xf   :  { %1441 = shalt.err (!%p1438_p7)
}
  0x10   :  { %s1469_s22 = smov 128   ;;  %s1470_s23 = smov 8  }
  0x11   :  { %21 = dma.hbm_to_vmem [thread:$0]  %s1782_s0, 4096, %s16_s13, [#allocation3], %s1469_s22, %s1469_s22, %s1470_s23  }
  0x12   :  { %s1471_s26 = smov [#allocation4]   ;;  %s1442_s30 = scalar_lea.hbm %s1783_s1, 6144 }
  0x13   :  { %s27_s27 = sshll.u32 %s1471_s26, 4  ;;  %p1443_p8 = scmp.ne.s32.totalorder %s1783_s1, %s1442_s30  ;;  %s28_s27 = int_to_ptr.vmem [resolvable:$true] %s27_s27 }
  0x14   :  { %p1446_p9 = scmp.lt.u32.totalorder %s1442_s30, %s1783_s1 }
  0x16   :  { %p1448_p10 = pnand %p1446_p9, %p1443_p8 }
  0x18   :  { %1451 = shalt.err (!%p1448_p10)
}
  0x19   :  { %s1452_s8 = scalar_lea.vmem %s28_s27, 6144  ;;  %p1457_p12 = scmp.lt.s32.totalorder %s28_s27, %s28_s27 }
  0x1a   :  { %p1453_p11 = scmp.ne.s32.totalorder %s28_s27, %s1452_s8  ;;  %p1458_p13 = scmp.lt.s32.totalorder %s1452_s8, %s1452_s8 }
  0x1c   :  { %p1459_p0 = por %p1458_p13, %p1457_p12 }
  0x1e   :  { %p1460_p1 = pnand %p1459_p0, %p1453_p11 }
  0x20   :  { %1463 = shalt.err (!%p1460_p1)
}
  0x21   :  { %33 = dma.hbm_to_vmem [thread:$0]  %s1783_s1, 6144, %s28_s27, [#allocation5], %s1469_s22, %s1469_s22, %s1470_s23  }
  0x22   :  { %1464 = dma.done.wait [#allocation3], 4096  }
  0x23   :  { %1465 = vsyncadd [#allocation3], 4294963200 }
  0x24   :  { %1466 = dma.done.wait [#allocation5], 6144  }
  0x25   :  { %1467 = vsyncadd [#allocation5], 4294961152  ;;  %v74_v0 = vld [vmem:[#allocation4] sm:$0xff]  ;;  %v75_v1 = vld [vmem:[#allocation4 + $0x8] sm:$0xff]  ;;  %vm878_vm0 = vcmask 523264  }
  0x26   :  { %v76_v2 = vld [vmem:[#allocation4 + $0x10] sm:$0xff]  ;;  %v1304_v3 = vpack.c.bf16 %v75_v1, %v74_v0  ;;  %v77_v4 = vld [vmem:[#allocation4 + $0x18] sm:$0xff]  ;;  %v78_v6 = vld [vmem:[#allocation4 + $0x20] sm:$0xff] }
  0x27   :  { %v1308_v5 = vpack.c.bf16 %v77_v4, %v76_v2  ;;  %v79_v7 = vld [vmem:[#allocation4 + $0x28] sm:$0xff]  ;;  %v42_v9 = vld [vmem:[#allocation2] sm:$0xff]  ;;  %v80_v10 = vld [vmem:[#allocation4 + $0x30] sm:$0xff] }
  0x28   :  { %1305 = vmatprep.subr.bf16.mxu0 %v1304_v3  ;;  %1400 = vmatprep.subr.bf16.mxu1 %v1304_v3  ;;  %v1312_v8 = vpack.c.bf16 %v79_v7, %v78_v6  ;;  %v81_v11 = vld [vmem:[#allocation4 + $0x38] sm:$0xff]  ;;  %v82_v13 = vld [vmem:[#allocation4 + $0x40] sm:$0xff]  ;;  %v83_v14 = vld [vmem:[#allocation4 + $0x48] sm:$0xff] }
  0x29   :  { %1307 = vmatpush3.bf16.msra.mxu0 %v1304_v3  ;;  %1408 = vmatpush3.bf16.msra.mxu1 %v1304_v3  ;;  %v1316_v12 = vpack.c.bf16 %v81_v11, %v80_v10  ;;  %v58_v15 = vld [vmem:[#allocation2 + $0x80] sm:$0xff]  ;;  %v1320_v16 = vpack.c.bf16 %v83_v14, %v82_v13  ;;  %v84_v17 = vld [vmem:[#allocation4 + $0x50] sm:$0xff]  ;;  %v85_v18 = vld [vmem:[#allocation4 + $0x58] sm:$0xff] }
  0x2a   :  { %1309 = vmatprep.subr.bf16.mxu0 %v1308_v5  ;;  %1401 = vmatprep.subr.bf16.mxu1 %v1308_v5  ;;  %v1324_v19 = vpack.c.bf16 %v85_v18, %v84_v17  ;;  %v86_v20 = vld [vmem:[#allocation4 + $0x60] sm:$0xff]  ;;  %v87_v21 = vld [vmem:[#allocation4 + $0x68] sm:$0xff]  ;;  %v88_v23 = vld [vmem:[#allocation4 + $0x70] sm:$0xff] }
  0x2b   :  { %1096 = vmatprep.mubr.f32.mxu0 %v42_v9  ;;  %1120 = vmatprep.mubr.f32.mxu1 %v58_v15  ;;  %v1328_v22 = vpack.c.bf16 %v87_v21, %v86_v20  ;;  %v89_v24 = vld [vmem:[#allocation4 + $0x78] sm:$0xff]  ;;  %v91_v26 = vld [vmem:[#allocation4 + $0x80] sm:$0xff]  ;;  %v92_v27 = vld [vmem:[#allocation4 + $0x88] sm:$0xff] }
  0x2c   :  { %v1332_v25 = vpack.c.bf16 %v89_v24, %v88_v23  ;;  %v1336_v28 = vpack.c.bf16 %v92_v27, %v91_v26  ;;  %v93_v29 = vld [vmem:[#allocation4 + $0x90] sm:$0xff]  ;;  %v94_v30 = vld [vmem:[#allocation4 + $0x98] sm:$0xff]  ;;  %v43_v31 = vld [vmem:[#allocation2 + $0x8] sm:$0xff] }
  0x2d   :  { %1311 = vmatpush3.bf16.msra.mxu0 %v1308_v5  ;;  %1409 = vmatpush3.bf16.msra.mxu1 %v1308_v5  ;;  %v59_v32 = vld [vmem:[#allocation2 + $0x88] sm:$0xff]  ;;  %v44_v33 = vld [vmem:[#allocation2 + $0x10] sm:$0xff]  ;;  %v1340_v35 = vpack.c.bf16 %v94_v30, %v93_v29  ;;  %v95_v36 = vld [vmem:[#allocation4 + $0xa0] sm:$0xff] }
  0x2e   :  { %1313 = vmatprep.subr.bf16.mxu0 %v1312_v8  ;;  %1402 = vmatprep.subr.bf16.mxu1 %v1312_v8  ;;  %v60_v34 = vld [vmem:[#allocation2 + $0x90] sm:$0xff]  ;;  %v96_v37 = vld [vmem:[#allocation4 + $0xa8] sm:$0xff]  ;;  %v45_v38 = vld [vmem:[#allocation2 + $0x18] sm:$0xff] }
  0x2f   :  { %v61_v39 = vld [vmem:[#allocation2 + $0x98] sm:$0xff]  ;;  %v46_v40 = vld [vmem:[#allocation2 + $0x20] sm:$0xff]  ;;  %v1344_v42 = vpack.c.bf16 %v96_v37, %v95_v36  ;;  %v97_v43 = vld [vmem:[#allocation4 + $0xb0] sm:$0xff] }
  0x30   :  { %v62_v41 = vld [vmem:[#allocation2 + $0xa0] sm:$0xff]  ;;  %v98_v44 = vld [vmem:[#allocation4 + $0xb8] sm:$0xff]  ;;  %v47_v45 = vld [vmem:[#allocation2 + $0x28] sm:$0xff] }
  0x31   :  { %1315 = vmatpush3.bf16.msra.mxu0 %v1312_v8  ;;  %1410 = vmatpush3.bf16.msra.mxu1 %v1312_v8  ;;  %v63_v46 = vld [vmem:[#allocation2 + $0xa8] sm:$0xff]  ;;  %v48_v47 = vld [vmem:[#allocation2 + $0x30] sm:$0xff]  ;;  %v1348_v49 = vpack.c.bf16 %v98_v44, %v97_v43  ;;  %v99_v50 = vld [vmem:[#allocation4 + $0xc0] sm:$0xff] }
  0x32   :  { %1317 = vmatprep.subr.bf16.mxu0 %v1316_v12  ;;  %1403 = vmatprep.subr.bf16.mxu1 %v1316_v12  ;;  %v64_v48 = vld [vmem:[#allocation2 + $0xb0] sm:$0xff]  ;;  %v100_v51 = vld [vmem:[#allocation4 + $0xc8] sm:$0xff]  ;;  %v49_v52 = vld [vmem:[#allocation2 + $0x38] sm:$0xff] }
  0x33   :  { %v65_v53 = vld [vmem:[#allocation2 + $0xb8] sm:$0xff]  ;;  %v50_v54 = vld [vmem:[#allocation2 + $0x40] sm:$0xff]  ;;  %v1352_v56 = vpack.c.bf16 %v100_v51, %v99_v50  ;;  %v101_v57 = vld [vmem:[#allocation4 + $0xd0] sm:$0xff] }
  0x34   :  { %v66_v55 = vld [vmem:[#allocation2 + $0xc0] sm:$0xff]  ;;  %v102_v58 = vld [vmem:[#allocation4 + $0xd8] sm:$0xff]  ;;  %v51_v59 = vld [vmem:[#allocation2 + $0x48] sm:$0xff] }
  0x35   :  { %1319 = vmatpush3.bf16.msra.mxu0 %v1316_v12  ;;  %1411 = vmatpush3.bf16.msra.mxu1 %v1316_v12  ;;  %v67_v60 = vld [vmem:[#allocation2 + $0xc8] sm:$0xff]  ;;  %v52_v61 = vld [vmem:[#allocation2 + $0x50] sm:$0xff]  ;;  %v1356_v63 = vpack.c.bf16 %v102_v58, %v101_v57  ;;  %v103_v0 = vld [vmem:[#allocation4 + $0xe0] sm:$0xff] }
  0x36   :  { %1321 = vmatprep.subr.bf16.mxu0 %v1320_v16  ;;  %1404 = vmatprep.subr.bf16.mxu1 %v1320_v16  ;;  %v68_v62 = vld [vmem:[#allocation2 + $0xd0] sm:$0xff]  ;;  %v104_v1 = vld [vmem:[#allocation4 + $0xe8] sm:$0xff]  ;;  %v53_v2 = vld [vmem:[#allocation2 + $0x58] sm:$0xff] }
  0x37   :  { %v69_v3 = vld [vmem:[#allocation2 + $0xd8] sm:$0xff]  ;;  %v54_v4 = vld [vmem:[#allocation2 + $0x60] sm:$0xff]  ;;  %v1360_v6 = vpack.c.bf16 %v104_v1, %v103_v0  ;;  %v55_v7 = vld [vmem:[#allocation2 + $0x68] sm:$0xff] }
  0x38   :  { %v70_v5 = vld [vmem:[#allocation2 + $0xe0] sm:$0xff]  ;;  %v71_v8 = vld [vmem:[#allocation2 + $0xe8] sm:$0xff]  ;;  %v56_v9 = vld [vmem:[#allocation2 + $0x70] sm:$0xff] }
  0x39   :  { %1323 = vmatpush3.bf16.msra.mxu0 %v1320_v16  ;;  %1412 = vmatpush3.bf16.msra.mxu1 %v1320_v16  ;;  %v72_v10 = vld [vmem:[#allocation2 + $0xf0] sm:$0xff]  ;;  %v57_v11 = vld [vmem:[#allocation2 + $0x78] sm:$0xff]  ;;  %v108_v16 = vld [vmem:[#allocation4 + $0x100] sm:$0xff] }
  0x3a   :  { %1325 = vmatprep.subr.bf16.mxu0 %v1324_v19  ;;  %1405 = vmatprep.subr.bf16.mxu1 %v1324_v19  ;;  %v73_v12 = vld [vmem:[#allocation2 + $0xf8] sm:$0xff]  ;;  %v105_v13 = vld [vmem:[#allocation4 + $0xf0] sm:$0xff]  ;;  %v109_v17 = vld [vmem:[#allocation4 + $0x108] sm:$0xff] }
  0x3b   :  { %v106_v14 = vld [vmem:[#allocation4 + $0xf8] sm:$0xff]  ;;  %v110_v18 = vld [vmem:[#allocation4 + $0x110] sm:$0xff]  ;;  %v113_v23 = vld [vmem:[#allocation4 + $0x128] sm:$0xff] }
  0x3c   :  { %v1364_v15 = vpack.c.bf16 %v106_v14, %v105_v13  ;;  %v111_v20 = vld [vmem:[#allocation4 + $0x118] sm:$0xff]  ;;  %v117_v29 = vld [vmem:[#allocation4 + $0x148] sm:$0xff]  ;;  %v1519_v37 = vld [vmem:[%s1784_s2] ss:$0 sm:$0xff] }
  0x3d   :  { %1327 = vmatpush3.bf16.msra.mxu0 %v1324_v19  ;;  %1413 = vmatpush3.bf16.msra.mxu1 %v1324_v19  ;;  %v1368_v19 = vpack.c.bf16 %v109_v17, %v108_v16  ;;  %v1372_v21 = vpack.c.bf16 %v111_v20, %v110_v18  ;;  %v115_v26 = vld [vmem:[#allocation4 + $0x138] sm:$0xff] }
  0x3e   :  { %1329 = vmatprep.subr.bf16.mxu0 %v1328_v22  ;;  %1406 = vmatprep.subr.bf16.mxu1 %v1328_v22 }
  0x41   :  { %1331 = vmatpush3.bf16.msra.mxu0 %v1328_v22  ;;  %1414 = vmatpush3.bf16.msra.mxu1 %v1328_v22  ;;  %v112_v22 = vld [vmem:[#allocation4 + $0x120] sm:$0xff] }
  0x42   :  { %1333 = vmatprep.subr.bf16.mxu0 %v1332_v25  ;;  %1407 = vmatprep.subr.bf16.mxu1 %v1332_v25  ;;  %v1376_v24 = vpack.c.bf16 %v113_v23, %v112_v22 }
  0x45   :  { %1335 = vmatpush3.bf16.msra.mxu0 %v1332_v25  ;;  %1415 = vmatpush3.bf16.msra.mxu1 %v1332_v25  ;;  %v114_v25 = vld [vmem:[#allocation4 + $0x130] sm:$0xff] }
  0x46   :  { %1337 = vmatprep.subr.bf16.mxu1 %v1336_v28  ;;  %1369 = vmatprep.subr.bf16.mxu0 %v1368_v19  ;;  %v1380_v27 = vpack.c.bf16 %v115_v26, %v114_v25 }
  0x48   :  { %1097 = vmatmul.mubr.f32.vlgmr.msra.gmra.mrb[0].mxu0 %v43_v31  ;;  %1121 = vmatmul.mubr.f32.vlgmr.msra.gmra.mrb[0].mxu1 %v59_v32  ;;  %v118_v31 = vld [vmem:[#allocation4 + $0x150] sm:$0xff]  ;;  %v119_v32 = vld [vmem:[#allocation4 + $0x158] sm:$0xff] }
  0x49   :  { %1099 = vmatprep.mubr.f32.mxu0 %v44_v33  ;;  %1123 = vmatprep.mubr.f32.mxu1 %v60_v34  ;;  %v1388_v33 = vpack.c.bf16 %v119_v32, %v118_v31  ;;  %v120_v34 = vld [vmem:[#allocation4 + $0x160] sm:$0xff] }
  0x4a   :  { %1339 = vmatpush3.bf16.msra.mxu1 %v1336_v28  ;;  %1371 = vmatpush3.bf16.msra.mxu0 %v1368_v19  ;;  %v116_v28 = vld [vmem:[#allocation4 + $0x140] sm:$0xff] }
  0x4b   :  { %1341 = vmatprep.subr.bf16.mxu1 %v1340_v35  ;;  %1373 = vmatprep.subr.bf16.mxu0 %v1372_v21  ;;  %v1384_v30 = vpack.c.bf16 %v117_v29, %v116_v28 }
  0x4c   :  { %1100 = vmatmul.mubr.f32.gmra.mrb[2].mxu0 %v45_v38  ;;  %1124 = vmatmul.mubr.f32.gmra.mrb[2].mxu1 %v61_v39 }
  0x4d   :  { %1102 = vmatprep.mubr.f32.mxu0 %v46_v40  ;;  %1126 = vmatprep.mubr.f32.mxu1 %v62_v41 }
  0x4e   :  { %1343 = vmatpush3.bf16.msra.mxu1 %v1340_v35  ;;  %1375 = vmatpush3.bf16.msra.mxu0 %v1372_v21  ;;  %v121_v35 = vld [vmem:[#allocation4 + $0x168] sm:$0xff] }
  0x4f   :  { %1345 = vmatprep.subr.bf16.mxu1 %v1344_v42  ;;  %1377 = vmatprep.subr.bf16.mxu0 %v1376_v24  ;;  %v1392_v36 = vpack.c.bf16 %v121_v35, %v120_v34 }
  0x50   :  { %1103 = vmatmul.mubr.f32.gmra.mrb[4].mxu0 %v47_v45  ;;  %1127 = vmatmul.mubr.f32.gmra.mrb[4].mxu1 %v63_v46 }
  0x51   :  { %1105 = vmatprep.mubr.f32.mxu0 %v48_v47  ;;  %1129 = vmatprep.mubr.f32.mxu1 %v64_v48 }
  0x52   :  { %1347 = vmatpush3.bf16.msra.mxu1 %v1344_v42  ;;  %1379 = vmatpush3.bf16.msra.mxu0 %v1376_v24 }
  0x53   :  { %1349 = vmatprep.subr.bf16.mxu1 %v1348_v49  ;;  %1381 = vmatprep.subr.bf16.mxu0 %v1380_v27 }
  0x54   :  { %1106 = vmatmul.mubr.f32.gmra.mrb[6].mxu0 %v49_v52  ;;  %1130 = vmatmul.mubr.f32.gmra.mrb[6].mxu1 %v65_v53 }
  0x55   :  { %1108 = vmatprep.mubr.f32.mxu0 %v50_v54  ;;  %1132 = vmatprep.mubr.f32.mxu1 %v66_v55 }
  0x56   :  { %1351 = vmatpush3.bf16.msra.mxu1 %v1348_v49  ;;  %1383 = vmatpush3.bf16.msra.mxu0 %v1380_v27 }
  0x57   :  { %1353 = vmatprep.subr.bf16.mxu1 %v1352_v56  ;;  %1385 = vmatprep.subr.bf16.mxu0 %v1384_v30 }
  0x58   :  { %1109 = vmatmul.mubr.f32.gmra.mrb[8].mxu0 %v51_v59  ;;  %1133 = vmatmul.mubr.f32.gmra.mrb[8].mxu1 %v67_v60 }
  0x59   :  { %1111 = vmatprep.mubr.f32.mxu0 %v52_v61  ;;  %1135 = vmatprep.mubr.f32.mxu1 %v68_v62 }
  0x5a   :  { %1355 = vmatpush3.bf16.msra.mxu1 %v1352_v56  ;;  %1387 = vmatpush3.bf16.msra.mxu0 %v1384_v30 }
  0x5b   :  { %1357 = vmatprep.subr.bf16.mxu1 %v1356_v63  ;;  %1389 = vmatprep.subr.bf16.mxu0 %v1388_v33 }
  0x5c   :  { %1112 = vmatmul.mubr.f32.gmra.mrb[10].mxu0 %v53_v2  ;;  %1136 = vmatmul.mubr.f32.gmra.mrb[10].mxu1 %v69_v3 }
  0x5d   :  { %1114 = vmatprep.mubr.f32.mxu0 %v54_v4  ;;  %1138 = vmatprep.mubr.f32.mxu1 %v70_v5 }
  0x5e   :  { %1359 = vmatpush3.bf16.msra.mxu1 %v1356_v63  ;;  %1391 = vmatpush3.bf16.msra.mxu0 %v1388_v33 }
  0x5f   :  { %1361 = vmatprep.subr.bf16.mxu1 %v1360_v6  ;;  %1393 = vmatprep.subr.bf16.mxu0 %v1392_v36 }
  0x60   :  { %1115 = vmatmul.mubr.f32.gmra.mrb[12].mxu0 %v55_v7  ;;  %1139 = vmatmul.mubr.f32.gmra.mrb[12].mxu1 %v71_v8 }
  0x61   :  { %1117 = vmatprep.mubr.f32.mxu0 %v56_v9  ;;  %1141 = vmatprep.mubr.f32.mxu1 %v72_v10 }
  0x62   :  { %1363 = vmatpush3.bf16.msra.mxu1 %v1360_v6  ;;  %1395 = vmatpush3.bf16.msra.mxu0 %v1392_v36 }
  0x63   :  { %1365 = vmatprep.subr.bf16.mxu1 %v1364_v15 }
  0x64   :  { %1118 = vmatmul.mubr.f32.gmra.mrb[14].mxu0 %v57_v11  ;;  %1142 = vmatmul.mubr.f32.gmra.mrb[14].mxu1 %v73_v12 }
  0x66   :  { %1367 = vmatpush3.bf16.msra.mxu1 %v1364_v15 }
 0x11b   :  { %v1098_v38 = vpop.f32.mrb[0].mxu0  ;;  %v1521_v39 = vpop.f32.mrb[0].mxu1 }
 0x11c   :  { %v203_v40 = vadd.f32 %v1098_v38, %v1519_v37  ;;  %v197_v41 = vpop.f32.mrb[1].mxu0  ;;  %v1524_v42 = vpop.f32.mrb[1].mxu1 }
 0x11d   :  { %v198_v43 = vadd.f32 %v1519_v37, %v197_v41  ;;  %v278_v30 = vadd.f32 %v1519_v37, %v1524_v42 }
 0x11e   :  { %v357_v47 = vmax.f32 %v203_v40, 0.0 }
 0x11f   :  { %v356_v44 = vmax.f32 %v198_v43, 0.0  ;;  %v1101_v45 = vpop.f32.mrb[2].mxu0  ;;  %v1527_v46 = vpop.f32.mrb[2].mxu1  ;;  %v372_v40 = vmax.f32 %v278_v30, 0.0 }
 0x120   :  { %v213_v48 = vadd.f32 %v1101_v45, %v1519_v37  ;;  %v207_v49 = vpop.f32.mrb[3].mxu0  ;;  %v1530_v50 = vpop.f32.mrb[3].mxu1 }
 0x121   :  { %v208_v51 = vadd.f32 %v1519_v37, %v207_v49  ;;  %1176 = vmatprep.mubr.f32.mxu1 %v356_v44  ;;  %v288_v41 = vadd.f32 %v1519_v37, %v1530_v50  ;;  %v283_v44 = vadd.f32 %v1521_v39, %v1519_v37 }
 0x122   :  { %1177 = vmatmul.mubr.f32.vlgmr.msra.gmra.mrb[16].mxu1 %v357_v47  ;;  %v359_v55 = vmax.f32 %v213_v48, 0.0  ;;  %v293_v48 = vadd.f32 %v1527_v46, %v1519_v37 }
 0x123   :  { %v358_v52 = vmax.f32 %v208_v51, 0.0  ;;  %v1104_v53 = vpop.f32.mrb[4].mxu0  ;;  %v1533_v54 = vpop.f32.mrb[4].mxu1  ;;  %v374_v42 = vmax.f32 %v288_v41, 0.0  ;;  %v373_v47 = vmax.f32 %v283_v44, 0.0 }
 0x124   :  { %v223_v56 = vadd.f32 %v1104_v53, %v1519_v37  ;;  %v217_v57 = vpop.f32.mrb[5].mxu0  ;;  %v1536_v58 = vpop.f32.mrb[5].mxu1  ;;  %v375_v51 = vmax.f32 %v293_v48, 0.0  ;;  %v303_v39 = vadd.f32 %v1533_v54, %v1519_v37 }
 0x125   :  { %v218_v59 = vadd.f32 %v1519_v37, %v217_v57  ;;  %1179 = vmatprep.mubr.f32.mxu1 %v358_v52  ;;  %v298_v45 = vadd.f32 %v1519_v37, %v1536_v58 }
 0x126   :  { %1180 = vmatmul.mubr.f32.gmra.mrb[18].mxu1 %v359_v55  ;;  %v361_v63 = vmax.f32 %v223_v56, 0.0  ;;  %v377_v55 = vmax.f32 %v303_v39, 0.0 }
 0x127   :  { %v360_v60 = vmax.f32 %v218_v59, 0.0  ;;  %v1107_v61 = vpop.f32.mrb[6].mxu0  ;;  %v1539_v62 = vpop.f32.mrb[6].mxu1  ;;  %v376_v49 = vmax.f32 %v298_v45, 0.0 }
 0x128   :  { %v233_v0 = vadd.f32 %v1107_v61, %v1519_v37  ;;  %v227_v1 = vpop.f32.mrb[7].mxu0  ;;  %v307_v2 = vpop.f32.mrb[7].mxu1  ;;  %v313_v56 = vadd.f32 %v1539_v62, %v1519_v37 }
 0x129   :  { %v228_v3 = vadd.f32 %v1519_v37, %v227_v1  ;;  %1182 = vmatprep.mubr.f32.mxu1 %v360_v60  ;;  %v308_v50 = vadd.f32 %v1519_v37, %v307_v2 }
 0x12a   :  { %1183 = vmatmul.mubr.f32.gmra.mrb[20].mxu1 %v361_v63  ;;  %v363_v7 = vmax.f32 %v233_v0, 0.0  ;;  %v379_v58 = vmax.f32 %v313_v56, 0.0 }
 0x12b   :  { %v362_v4 = vmax.f32 %v228_v3, 0.0  ;;  %v1110_v5 = vpop.f32.mrb[8].mxu0  ;;  %v1543_v6 = vpop.f32.mrb[8].mxu1  ;;  %v378_v52 = vmax.f32 %v308_v50, 0.0 }
 0x12c   :  { %v243_v8 = vadd.f32 %v1110_v5, %v1519_v37  ;;  %v237_v9 = vpop.f32.mrb[9].mxu0  ;;  %v317_v10 = vpop.f32.mrb[9].mxu1  ;;  %v323_v59 = vadd.f32 %v1543_v6, %v1519_v37 }
 0x12d   :  { %v238_v11 = vadd.f32 %v1519_v37, %v237_v9  ;;  %1185 = vmatprep.mubr.f32.mxu1 %v362_v4  ;;  %v318_v53 = vadd.f32 %v1519_v37, %v317_v10  ;;  %v1583_v10 = vld [vmem:[%s1784_s2 + $0x1] ss:$0 sm:$0xff] }
 0x12e   :  { %1186 = vmatmul.mubr.f32.gmra.mrb[22].mxu1 %v363_v7  ;;  %v365_v15 = vmax.f32 %v243_v8, 0.0  ;;  %v381_v61 = vmax.f32 %v323_v59, 0.0  ;;  %v122_v7 = vld [vmem:[#allocation4 + $0x170] sm:$0xff]  ;;  %v123_v8 = vld [vmem:[#allocation4 + $0x178] sm:$0xff] }
 0x12f   :  { %v364_v12 = vmax.f32 %v238_v11, 0.0  ;;  %v1113_v13 = vpop.f32.mrb[10].mxu0  ;;  %v1547_v14 = vpop.f32.mrb[10].mxu1  ;;  %v380_v46 = vmax.f32 %v318_v53, 0.0  ;;  %v1396_v9 = vpack.c.bf16 %v123_v8, %v122_v7 }
 0x130   :  { %v253_v16 = vadd.f32 %v1113_v13, %v1519_v37  ;;  %v247_v17 = vpop.f32.mrb[11].mxu0  ;;  %v327_v18 = vpop.f32.mrb[11].mxu1  ;;  %v333_v63 = vadd.f32 %v1547_v14, %v1519_v37 }
 0x131   :  { %v248_v19 = vadd.f32 %v1519_v37, %v247_v17  ;;  %1188 = vmatprep.mubr.f32.mxu1 %v364_v12  ;;  %v328_v57 = vadd.f32 %v1519_v37, %v327_v18  ;;  %1397 = vmatprep.subr.bf16.mxu0 %v1396_v9 }
 0x132   :  { %1189 = vmatmul.mubr.f32.gmra.mrb[24].mxu1 %v365_v15  ;;  %v367_v23 = vmax.f32 %v253_v16, 0.0  ;;  %v383_v1 = vmax.f32 %v333_v63, 0.0  ;;  %1399 = vmatpush3.bf16.msra.mxu0 %v1396_v9 }
 0x133   :  { %v366_v20 = vmax.f32 %v248_v19, 0.0  ;;  %v1116_v21 = vpop.f32.mrb[12].mxu0  ;;  %v1140_v22 = vpop.f32.mrb[12].mxu1  ;;  %v382_v54 = vmax.f32 %v328_v57, 0.0 }
 0x134   :  { %v263_v24 = vadd.f32 %v1116_v21, %v1519_v37  ;;  %v257_v25 = vpop.f32.mrb[13].mxu0  ;;  %v337_v26 = vpop.f32.mrb[13].mxu1  ;;  %v343_v2 = vadd.f32 %v1140_v22, %v1519_v37 }
 0x135   :  { %v258_v27 = vadd.f32 %v1519_v37, %v257_v25  ;;  %1191 = vmatprep.mubr.f32.mxu1 %v366_v20  ;;  %v338_v60 = vadd.f32 %v1519_v37, %v337_v26 }
 0x136   :  { %1192 = vmatmul.mubr.f32.gmra.mrb[26].mxu1 %v367_v23  ;;  %v369_v32 = vmax.f32 %v263_v24, 0.0  ;;  %v385_v4 = vmax.f32 %v343_v2, 0.0 }
 0x137   :  { %v368_v28 = vmax.f32 %v258_v27, 0.0  ;;  %v1119_v29 = vpop.f32.mrb[14].mxu0  ;;  %v1143_v31 = vpop.f32.mrb[14].mxu1  ;;  %v384_v62 = vmax.f32 %v338_v60, 0.0 }
 0x138   :  { %v273_v33 = vadd.f32 %v1119_v29, %v1519_v37  ;;  %v267_v34 = vpop.f32.mrb[15].mxu0  ;;  %v347_v35 = vpop.f32.mrb[15].mxu1  ;;  %v353_v5 = vadd.f32 %v1143_v31, %v1519_v37 }
 0x139   :  { %v268_v36 = vadd.f32 %v1519_v37, %v267_v34  ;;  %1194 = vmatprep.mubr.f32.mxu1 %v368_v28  ;;  %v348_v0 = vadd.f32 %v1519_v37, %v347_v35 }
 0x13a   :  { %1195 = vmatmul.mubr.f32.gmra.mrb[28].mxu1 %v369_v32  ;;  %v371_v43 = vmax.f32 %v273_v33, 0.0  ;;  %v387_v6 = vmax.f32 %v353_v5, 0.0 }
 0x13b   :  { %v370_v38 = vmax.f32 %v268_v36, 0.0  ;;  %v386_v3 = vmax.f32 %v348_v0, 0.0 }
 0x13d   :  { %1197 = vmatprep.mubr.f32.mxu1 %v370_v38 }
 0x13e   :  { %1198 = vmatmul.mubr.f32.gmra.mrb[30].mxu1 %v371_v43 }
 0x13f   :  { %1200 = vmatprep.mubr.f32.mxu1 %v372_v40 }
 0x142   :  { %1201 = vmatmul.mubr.f32.gmra.mrb[32].mxu1 %v373_v47 }
 0x143   :  { %1203 = vmatprep.mubr.f32.mxu1 %v374_v42 }
 0x146   :  { %1204 = vmatmul.mubr.f32.gmra.mrb[34].mxu1 %v375_v51 }
 0x147   :  { %1206 = vmatprep.mubr.f32.mxu1 %v376_v49 }
 0x14a   :  { %1207 = vmatmul.mubr.f32.gmra.mrb[36].mxu1 %v377_v55 }
 0x14b   :  { %1209 = vmatprep.mubr.f32.mxu1 %v378_v52 }
 0x14e   :  { %1210 = vmatmul.mubr.f32.gmra.mrb[38].mxu1 %v379_v58 }
 0x14f   :  { %1212 = vmatprep.mubr.f32.mxu1 %v380_v46 }
 0x152   :  { %1213 = vmatmul.mubr.f32.gmra.mrb[40].mxu1 %v381_v61 }
 0x153   :  { %1215 = vmatprep.mubr.f32.mxu1 %v382_v54 }
 0x156   :  { %1216 = vmatmul.mubr.f32.gmra.mrb[42].mxu1 %v383_v1 }
 0x157   :  { %1218 = vmatprep.mubr.f32.mxu1 %v384_v62 }
 0x15a   :  { %1219 = vmatmul.mubr.f32.gmra.mrb[44].mxu1 %v385_v4 }
 0x15b   :  { %1221 = vmatprep.mubr.f32.mxu1 %v386_v3 }
 0x15e   :  { %1222 = vmatmul.mubr.f32.gmra.mrb[46].mxu1 %v387_v6 }
 0x1f5   :  { %v1178_v11 = vpop.f32.mrb[16].mxu1 }
 0x1f6   :  { %v464_v12 = vadd.f32 %v1178_v11, %v1583_v10  ;;  %v458_v13 = vpop.f32.mrb[17].mxu1 }
 0x1f7   :  { %v459_v37 = vadd.f32 %v1583_v10, %v458_v13 }
 0x1f8   :  { %v618_v16 = vmax.f32 %v464_v12, 0.0 }
 0x1f9   :  { %v617_v14 = vmax.f32 %v459_v37, 0.0  ;;  %v1181_v15 = vpop.f32.mrb[18].mxu1 }
 0x1fa   :  { %v474_v17 = vadd.f32 %v1181_v15, %v1583_v10  ;;  %v468_v18 = vpop.f32.mrb[19].mxu1 }
 0x1fb   :  { %v469_v19 = vadd.f32 %v1583_v10, %v468_v18  ;;  %1256 = vmatprep.mubr.f32.mxu0 %v617_v14 }
 0x1fc   :  { %1257 = vmatmul.mubr.f32.vlgmr.msra.gmra.mrb[16].mxu0 %v618_v16  ;;  %v620_v22 = vmax.f32 %v474_v17, 0.0 }
 0x1fd   :  { %v619_v20 = vmax.f32 %v469_v19, 0.0  ;;  %v1184_v21 = vpop.f32.mrb[20].mxu1 }
 0x1fe   :  { %v484_v23 = vadd.f32 %v1184_v21, %v1583_v10  ;;  %v478_v24 = vpop.f32.mrb[21].mxu1 }
 0x1ff   :  { %v479_v25 = vadd.f32 %v1583_v10, %v478_v24  ;;  %1259 = vmatprep.mubr.f32.mxu0 %v619_v20 }
 0x200   :  { %1260 = vmatmul.mubr.f32.gmra.mrb[18].mxu0 %v620_v22  ;;  %v622_v28 = vmax.f32 %v484_v23, 0.0 }
 0x201   :  { %v621_v26 = vmax.f32 %v479_v25, 0.0  ;;  %v1187_v27 = vpop.f32.mrb[22].mxu1 }
 0x202   :  { %v494_v29 = vadd.f32 %v1187_v27, %v1583_v10  ;;  %v488_v30 = vpop.f32.mrb[23].mxu1 }
 0x203   :  { %v489_v31 = vadd.f32 %v1583_v10, %v488_v30  ;;  %1262 = vmatprep.mubr.f32.mxu0 %v621_v26 }
 0x204   :  { %1263 = vmatmul.mubr.f32.gmra.mrb[20].mxu0 %v622_v28  ;;  %v624_v34 = vmax.f32 %v494_v29, 0.0 }
 0x205   :  { %v623_v32 = vmax.f32 %v489_v31, 0.0  ;;  %v1190_v33 = vpop.f32.mrb[24].mxu1 }
 0x206   :  { %v504_v35 = vadd.f32 %v1190_v33, %v1583_v10  ;;  %v498_v36 = vpop.f32.mrb[25].mxu1 }
 0x207   :  { %v499_v38 = vadd.f32 %v1583_v10, %v498_v36  ;;  %1265 = vmatprep.mubr.f32.mxu0 %v623_v32 }
 0x208   :  { %1266 = vmatmul.mubr.f32.gmra.mrb[22].mxu0 %v624_v34  ;;  %v626_v43 = vmax.f32 %v504_v35, 0.0 }
 0x209   :  { %v625_v40 = vmax.f32 %v499_v38, 0.0  ;;  %v1193_v41 = vpop.f32.mrb[26].mxu1 }
 0x20a   :  { %v514_v44 = vadd.f32 %v1193_v41, %v1583_v10  ;;  %v508_v42 = vpop.f32.mrb[27].mxu1 }
 0x20b   :  { %v509_v45 = vadd.f32 %v1583_v10, %v508_v42  ;;  %1268 = vmatprep.mubr.f32.mxu0 %v625_v40 }
 0x20c   :  { %1269 = vmatmul.mubr.f32.gmra.mrb[24].mxu0 %v626_v43  ;;  %v628_v49 = vmax.f32 %v514_v44, 0.0 }
 0x20d   :  { %v627_v47 = vmax.f32 %v509_v45, 0.0  ;;  %v1196_v48 = vpop.f32.mrb[28].mxu1  ;;  %v1620_v45 = vld [vmem:[%s1784_s2 + $0x2] ss:$0 sm:$0xff] }
 0x20e   :  { %v524_v50 = vadd.f32 %v1196_v48, %v1583_v10  ;;  %v518_v51 = vpop.f32.mrb[29].mxu1 }
 0x20f   :  { %v519_v39 = vadd.f32 %v1583_v10, %v518_v51  ;;  %1271 = vmatprep.mubr.f32.mxu0 %v627_v47 }
 0x210   :  { %1272 = vmatmul.mubr.f32.gmra.mrb[26].mxu0 %v628_v49  ;;  %v630_v55 = vmax.f32 %v524_v50, 0.0 }
 0x211   :  { %v629_v52 = vmax.f32 %v519_v39, 0.0  ;;  %v1199_v53 = vpop.f32.mrb[30].mxu1 }
 0x212   :  { %v534_v56 = vadd.f32 %v1199_v53, %v1583_v10  ;;  %v528_v46 = vpop.f32.mrb[31].mxu1 }
 0x213   :  { %v529_v57 = vadd.f32 %v1583_v10, %v528_v46  ;;  %1274 = vmatprep.mubr.f32.mxu0 %v629_v52 }
 0x214   :  { %1275 = vmatmul.mubr.f32.gmra.mrb[28].mxu0 %v630_v55  ;;  %v632_v54 = vmax.f32 %v534_v56, 0.0 }
 0x215   :  { %v631_v58 = vmax.f32 %v529_v57, 0.0  ;;  %v1202_v59 = vpop.f32.mrb[32].mxu1 }
 0x216   :  { %v544_v60 = vadd.f32 %v1202_v59, %v1583_v10  ;;  %v538_v61 = vpop.f32.mrb[33].mxu1 }
 0x217   :  { %v539_v63 = vadd.f32 %v1583_v10, %v538_v61  ;;  %1277 = vmatprep.mubr.f32.mxu0 %v631_v58 }
 0x218   :  { %1278 = vmatmul.mubr.f32.gmra.mrb[30].mxu0 %v632_v54  ;;  %v634_v1 = vmax.f32 %v544_v60, 0.0 }
 0x219   :  { %v633_v62 = vmax.f32 %v539_v63, 0.0  ;;  %v1205_v0 = vpop.f32.mrb[34].mxu1 }
 0x21a   :  { %v554_v2 = vadd.f32 %v1205_v0, %v1583_v10  ;;  %v548_v3 = vpop.f32.mrb[35].mxu1 }
 0x21b   :  { %v549_v4 = vadd.f32 %v1583_v10, %v548_v3  ;;  %1280 = vmatprep.mubr.f32.mxu0 %v633_v62 }
 0x21c   :  { %1281 = vmatmul.mubr.f32.gmra.mrb[32].mxu0 %v634_v1  ;;  %v636_v7 = vmax.f32 %v554_v2, 0.0 }
 0x21d   :  { %v635_v5 = vmax.f32 %v549_v4, 0.0  ;;  %v1208_v6 = vpop.f32.mrb[36].mxu1 }
 0x21e   :  { %v564_v8 = vadd.f32 %v1208_v6, %v1583_v10  ;;  %v558_v9 = vpop.f32.mrb[37].mxu1 }
 0x21f   :  { %v559_v11 = vadd.f32 %v1583_v10, %v558_v9  ;;  %1283 = vmatprep.mubr.f32.mxu0 %v635_v5 }
 0x220   :  { %1284 = vmatmul.mubr.f32.gmra.mrb[34].mxu0 %v636_v7  ;;  %v638_v37 = vmax.f32 %v564_v8, 0.0 }
 0x221   :  { %v637_v12 = vmax.f32 %v559_v11, 0.0  ;;  %v1211_v13 = vpop.f32.mrb[38].mxu1 }
 0x222   :  { %v574_v14 = vadd.f32 %v1211_v13, %v1583_v10  ;;  %v568_v15 = vpop.f32.mrb[39].mxu1 }
 0x223   :  { %v569_v16 = vadd.f32 %v1583_v10, %v568_v15  ;;  %1286 = vmatprep.mubr.f32.mxu0 %v637_v12 }
 0x224   :  { %1287 = vmatmul.mubr.f32.gmra.mrb[36].mxu0 %v638_v37  ;;  %v640_v19 = vmax.f32 %v574_v14, 0.0 }
 0x225   :  { %v639_v17 = vmax.f32 %v569_v16, 0.0  ;;  %v1214_v18 = vpop.f32.mrb[40].mxu1 }
 0x226   :  { %v584_v20 = vadd.f32 %v1214_v18, %v1583_v10  ;;  %v578_v21 = vpop.f32.mrb[41].mxu1 }
 0x227   :  { %v579_v22 = vadd.f32 %v1583_v10, %v578_v21  ;;  %1289 = vmatprep.mubr.f32.mxu0 %v639_v17 }
 0x228   :  { %1290 = vmatmul.mubr.f32.gmra.mrb[38].mxu0 %v640_v19  ;;  %v642_v25 = vmax.f32 %v584_v20, 0.0 }
 0x229   :  { %v641_v23 = vmax.f32 %v579_v22, 0.0  ;;  %v1217_v24 = vpop.f32.mrb[42].mxu1 }
 0x22a   :  { %v594_v26 = vadd.f32 %v1217_v24, %v1583_v10  ;;  %v588_v27 = vpop.f32.mrb[43].mxu1 }
 0x22b   :  { %v589_v28 = vadd.f32 %v1583_v10, %v588_v27  ;;  %1292 = vmatprep.mubr.f32.mxu0 %v641_v23 }
 0x22c   :  { %1293 = vmatmul.mubr.f32.gmra.mrb[40].mxu0 %v642_v25  ;;  %v644_v31 = vmax.f32 %v594_v26, 0.0 }
 0x22d   :  { %v643_v29 = vmax.f32 %v589_v28, 0.0  ;;  %v1220_v30 = vpop.f32.mrb[44].mxu1 }
 0x22e   :  { %v604_v32 = vadd.f32 %v1220_v30, %v1583_v10  ;;  %v598_v33 = vpop.f32.mrb[45].mxu1 }
 0x22f   :  { %v599_v34 = vadd.f32 %v1583_v10, %v598_v33  ;;  %1295 = vmatprep.mubr.f32.mxu0 %v643_v29 }
 0x230   :  { %1296 = vmatmul.mubr.f32.gmra.mrb[42].mxu0 %v644_v31  ;;  %v646_v38 = vmax.f32 %v604_v32, 0.0 }
 0x231   :  { %v645_v35 = vmax.f32 %v599_v34, 0.0  ;;  %v1223_v36 = vpop.f32.mrb[46].mxu1 }
 0x232   :  { %v614_v40 = vadd.f32 %v1223_v36, %v1583_v10  ;;  %v608_v41 = vpop.f32.mrb[47].mxu1 }
 0x233   :  { %v609_v43 = vadd.f32 %v1583_v10, %v608_v41  ;;  %1298 = vmatprep.mubr.f32.mxu0 %v645_v35 }
 0x234   :  { %1299 = vmatmul.mubr.f32.gmra.mrb[44].mxu0 %v646_v38  ;;  %v648_v42 = vmax.f32 %v614_v40, 0.0 }
 0x235   :  { %v647_v44 = vmax.f32 %v609_v43, 0.0 }
 0x237   :  { %1301 = vmatprep.mubr.f32.mxu0 %v647_v44 }
 0x238   :  { %1302 = vmatmul.mubr.f32.gmra.mrb[46].mxu0 %v648_v42 }
 0x2cf   :  { %v1258_v47 = vpop.f32.mrb[16].mxu0 }
 0x2d0   :  { %v725_v48 = vadd.f32 %v1258_v47, %v1620_v45  ;;  %v719_v49 = vpop.f32.mrb[17].mxu0 }
 0x2d1   :  { %v720_v50 = vadd.f32 %v1620_v45, %v719_v49 }
 0x2d2   :  { %880 = vst.msk [vmem:[%s1785_s3 + $0x8] sm:$0xff] %vm878_vm0, %v725_v48 }
 0x2d3   :  { %879 = vst.msk [vmem:[%s1785_s3] sm:$0xff] %vm878_vm0, %v720_v50  ;;  %v1261_v10 = vpop.f32.mrb[18].mxu0 }
 0x2d4   :  { %v735_v51 = vadd.f32 %v1261_v10, %v1620_v45  ;;  %v729_v39 = vpop.f32.mrb[19].mxu0 }
 0x2d5   :  { %v730_v52 = vadd.f32 %v1620_v45, %v729_v39 }
 0x2d6   :  { %882 = vst.msk [vmem:[%s1785_s3 + $0x18] sm:$0xff] %vm878_vm0, %v735_v51 }
 0x2d7   :  { %881 = vst.msk [vmem:[%s1785_s3 + $0x10] sm:$0xff] %vm878_vm0, %v730_v52  ;;  %v1264_v53 = vpop.f32.mrb[20].mxu0 }
 0x2d8   :  { %v745_v55 = vadd.f32 %v1264_v53, %v1620_v45  ;;  %v739_v56 = vpop.f32.mrb[21].mxu0 }
 0x2d9   :  { %v740_v46 = vadd.f32 %v1620_v45, %v739_v56 }
 0x2da   :  { %884 = vst.msk [vmem:[%s1785_s3 + $0x28] sm:$0xff] %vm878_vm0, %v745_v55 }
 0x2db   :  { %883 = vst.msk [vmem:[%s1785_s3 + $0x20] sm:$0xff] %vm878_vm0, %v740_v46  ;;  %v1267_v57 = vpop.f32.mrb[22].mxu0 }
 0x2dc   :  { %v755_v58 = vadd.f32 %v1267_v57, %v1620_v45  ;;  %v749_v59 = vpop.f32.mrb[23].mxu0 }
 0x2dd   :  { %v750_v54 = vadd.f32 %v1620_v45, %v749_v59 }
 0x2de   :  { %886 = vst.msk [vmem:[%s1785_s3 + $0x38] sm:$0xff] %vm878_vm0, %v755_v58 }
 0x2df   :  { %885 = vst.msk [vmem:[%s1785_s3 + $0x30] sm:$0xff] %vm878_vm0, %v750_v54  ;;  %v1270_v60 = vpop.f32.mrb[24].mxu0 }
 0x2e0   :  { %v765_v61 = vadd.f32 %v1270_v60, %v1620_v45  ;;  %v759_v63 = vpop.f32.mrb[25].mxu0 }
 0x2e1   :  { %v760_v62 = vadd.f32 %v1620_v45, %v759_v63 }
 0x2e2   :  { %888 = vst.msk [vmem:[%s1785_s3 + $0x48] sm:$0xff] %vm878_vm0, %v765_v61 }
 0x2e3   :  { %887 = vst.msk [vmem:[%s1785_s3 + $0x40] sm:$0xff] %vm878_vm0, %v760_v62  ;;  %v1273_v0 = vpop.f32.mrb[26].mxu0 }
 0x2e4   :  { %v775_v1 = vadd.f32 %v1273_v0, %v1620_v45  ;;  %v769_v2 = vpop.f32.mrb[27].mxu0 }
 0x2e5   :  { %v770_v3 = vadd.f32 %v1620_v45, %v769_v2 }
 0x2e6   :  { %890 = vst.msk [vmem:[%s1785_s3 + $0x58] sm:$0xff] %vm878_vm0, %v775_v1 }
 0x2e7   :  { %889 = vst.msk [vmem:[%s1785_s3 + $0x50] sm:$0xff] %vm878_vm0, %v770_v3  ;;  %v1276_v4 = vpop.f32.mrb[28].mxu0 }
 0x2e8   :  { %v785_v5 = vadd.f32 %v1276_v4, %v1620_v45  ;;  %v779_v6 = vpop.f32.mrb[29].mxu0 }
 0x2e9   :  { %v780_v7 = vadd.f32 %v1620_v45, %v779_v6 }
 0x2ea   :  { %892 = vst.msk [vmem:[%s1785_s3 + $0x68] sm:$0xff] %vm878_vm0, %v785_v5 }
 0x2eb   :  { %891 = vst.msk [vmem:[%s1785_s3 + $0x60] sm:$0xff] %vm878_vm0, %v780_v7  ;;  %v1279_v8 = vpop.f32.mrb[30].mxu0 }
 0x2ec   :  { %v795_v9 = vadd.f32 %v1279_v8, %v1620_v45  ;;  %v789_v11 = vpop.f32.mrb[31].mxu0 }
 0x2ed   :  { %v790_v12 = vadd.f32 %v1620_v45, %v789_v11 }
 0x2ee   :  { %894 = vst.msk [vmem:[%s1785_s3 + $0x78] sm:$0xff] %vm878_vm0, %v795_v9 }
 0x2ef   :  { %893 = vst.msk [vmem:[%s1785_s3 + $0x70] sm:$0xff] %vm878_vm0, %v790_v12  ;;  %v1282_v13 = vpop.f32.mrb[32].mxu0 }
 0x2f0   :  { %v805_v37 = vadd.f32 %v1282_v13, %v1620_v45  ;;  %v799_v14 = vpop.f32.mrb[33].mxu0 }
 0x2f1   :  { %v800_v15 = vadd.f32 %v1620_v45, %v799_v14 }
 0x2f2   :  { %896 = vst.msk [vmem:[%s1785_s3 + $0x88] sm:$0xff] %vm878_vm0, %v805_v37 }
 0x2f3   :  { %895 = vst.msk [vmem:[%s1785_s3 + $0x80] sm:$0xff] %vm878_vm0, %v800_v15  ;;  %v1285_v16 = vpop.f32.mrb[34].mxu0 }
 0x2f4   :  { %v815_v17 = vadd.f32 %v1285_v16, %v1620_v45  ;;  %v809_v18 = vpop.f32.mrb[35].mxu0 }
 0x2f5   :  { %v810_v19 = vadd.f32 %v1620_v45, %v809_v18 }
 0x2f6   :  { %898 = vst.msk [vmem:[%s1785_s3 + $0x98] sm:$0xff] %vm878_vm0, %v815_v17 }
 0x2f7   :  { %897 = vst.msk [vmem:[%s1785_s3 + $0x90] sm:$0xff] %vm878_vm0, %v810_v19  ;;  %v1288_v20 = vpop.f32.mrb[36].mxu0 }
 0x2f8   :  { %v825_v21 = vadd.f32 %v1288_v20, %v1620_v45  ;;  %v819_v22 = vpop.f32.mrb[37].mxu0 }
 0x2f9   :  { %v820_v23 = vadd.f32 %v1620_v45, %v819_v22 }
 0x2fa   :  { %900 = vst.msk [vmem:[%s1785_s3 + $0xa8] sm:$0xff] %vm878_vm0, %v825_v21 }
 0x2fb   :  { %899 = vst.msk [vmem:[%s1785_s3 + $0xa0] sm:$0xff] %vm878_vm0, %v820_v23  ;;  %v1291_v24 = vpop.f32.mrb[38].mxu0 }
 0x2fc   :  { %v835_v25 = vadd.f32 %v1291_v24, %v1620_v45  ;;  %v829_v26 = vpop.f32.mrb[39].mxu0 }
 0x2fd   :  { %v830_v27 = vadd.f32 %v1620_v45, %v829_v26 }
 0x2fe   :  { %902 = vst.msk [vmem:[%s1785_s3 + $0xb8] sm:$0xff] %vm878_vm0, %v835_v25 }
 0x2ff   :  { %901 = vst.msk [vmem:[%s1785_s3 + $0xb0] sm:$0xff] %vm878_vm0, %v830_v27  ;;  %v1294_v28 = vpop.f32.mrb[40].mxu0 }
 0x300   :  { %v845_v29 = vadd.f32 %v1294_v28, %v1620_v45  ;;  %v839_v30 = vpop.f32.mrb[41].mxu0 }
 0x301   :  { %v840_v31 = vadd.f32 %v1620_v45, %v839_v30 }
 0x302   :  { %904 = vst.msk [vmem:[%s1785_s3 + $0xc8] sm:$0xff] %vm878_vm0, %v845_v29 }
 0x303   :  { %903 = vst.msk [vmem:[%s1785_s3 + $0xc0] sm:$0xff] %vm878_vm0, %v840_v31  ;;  %v1297_v32 = vpop.f32.mrb[42].mxu0 }
 0x304   :  { %v855_v33 = vadd.f32 %v1297_v32, %v1620_v45  ;;  %v849_v34 = vpop.f32.mrb[43].mxu0 }
 0x305   :  { %v850_v35 = vadd.f32 %v1620_v45, %v849_v34 }
 0x306   :  { %906 = vst.msk [vmem:[%s1785_s3 + $0xd8] sm:$0xff] %vm878_vm0, %v855_v33 }
 0x307   :  { %905 = vst.msk [vmem:[%s1785_s3 + $0xd0] sm:$0xff] %vm878_vm0, %v850_v35  ;;  %v1300_v36 = vpop.f32.mrb[44].mxu0 }
 0x308   :  { %v865_v38 = vadd.f32 %v1300_v36, %v1620_v45  ;;  %v859_v40 = vpop.f32.mrb[45].mxu0 }
 0x309   :  { %v860_v41 = vadd.f32 %v1620_v45, %v859_v40 }
 0x30a   :  { %908 = vst.msk [vmem:[%s1785_s3 + $0xe8] sm:$0xff] %vm878_vm0, %v865_v38 }
 0x30b   :  { %907 = vst.msk [vmem:[%s1785_s3 + $0xe0] sm:$0xff] %vm878_vm0, %v860_v41  ;;  %v1303_v43 = vpop.f32.mrb[46].mxu0 }
 0x30c   :  { %v875_v44 = vadd.f32 %v1303_v43, %v1620_v45  ;;  %v869_v42 = vpop.f32.mrb[47].mxu0 }
 0x30d   :  { %v870_v47 = vadd.f32 %v1620_v45, %v869_v42 }
 0x30e   :  { %910 = vst.msk [vmem:[%s1785_s3 + $0xf8] sm:$0xff] %vm878_vm0, %v875_v44 }
 0x30f   :  { %909 = vst.msk [vmem:[%s1785_s3 + $0xf0] sm:$0xff] %vm878_vm0, %v870_v47 }
 0x310   :  { %915 = vsyncpa [#allocation3], 1 }
 0x311   :  { %916 = vsyncpa [#allocation5], 1 }

</bundles_post_ra>
